<compile_context>
chip_gen: v6e
topology: v6e:2x2x1
jax: 0.10.0
libtpu: 0.0.40
codegen_flags: <defaults>
</compile_context>

<pallas_src>
import functools

import jax
import jax.numpy as jnp
from jax.experimental import pallas as pl
from jax.experimental.pallas import tpu as pltpu


def _round_up(x, m):
    return ((x + m - 1) // m) * m


def _vmem_capacity_bytes():
    """Per-core VMEM capacity; conservative (v7x) fallback if unqueryable."""
    try:
        return int(pltpu.get_tpu_info().vmem_capacity_bytes)
    except Exception:
        return 64 * 1024 * 1024


def _estimate_vmem_bytes(tq, *, wg, cg, kw, pad, x_itemsize, out_itemsize,
                         compute_itemsize):
    """Rough per-step VMEM footprint (lane-padded) used for tq / limit sizing."""
    cg_l = _round_up(cg, 128)                       # lane padding
    pad_al = _round_up(pad, 8) if pad > 0 else 0
    x_blk = 2 * tq * wg * cg_l * x_itemsize         # double-buffered input tile
    o_blk = 2 * tq * wg * cg_l * out_itemsize       # double-buffered output tile
    w_b = kw * _round_up(cg, 8) * cg_l * compute_itemsize     # weights (single buf)
    aux_b = 3 * _round_up(wg, 8) * cg_l * 4                   # bias/gamma/beta
    xbuf_b = wg * (pad_al + tq) * cg_l * compute_itemsize     # halo + staged tile
    y_live = 2 * tq * wg * cg_l * 4                 # f32 y values + working temps
    return x_blk + o_blk + w_b + aux_b + xbuf_b + y_live


def _choose_tq(requested, *, T, pad, wg, cg, kw, x_itemsize, out_itemsize,
               compute_itemsize, budget_bytes):
    """Temporal tile size: multiple of 8, >= pad, as large as the VMEM budget allows."""
    t_cap = _round_up(max(T, 1), 8)
    floor_tq = _round_up(max(8, pad), 8) if pad > 0 else 8
    tq = 512 if requested is None else int(requested)
    tq = _round_up(max(tq, 8), 8)
    tq = max(min(tq, t_cap), floor_tq)

    def est(t):
        return _estimate_vmem_bytes(t, wg=wg, cg=cg, kw=kw, pad=pad,
                                    x_itemsize=x_itemsize,
                                    out_itemsize=out_itemsize,
                                    compute_itemsize=compute_itemsize)

    while tq > floor_tq and est(tq) > budget_bytes:
        tq = max(floor_tq, _round_up(tq // 2, 8))
    return tq


def _tds_block_kernel(x_ref, w_ref, aux_ref, o_ref, xbuf, *,
                      kw, dilation, tq, wg, cg, pad, pad_al, eps, compute_dtype):
    """One (batch, T-tile) grid step.

    x_ref  : (1, wg, tq, cg)     input tile (caller dtype)
    w_ref  : (kw, cg, cg)        per-tap channel-mixing weights (compute_dtype)
    aux_ref: (3, wg, cg)         [conv bias, LN gamma, LN beta] (f32)
    o_ref  : (1, wg, tq, cg)     output tile
    xbuf   : (wg, pad_al+tq, cg) VMEM scratch: [causal halo | current tile] per
                                 width group, carried across T-tiles.

    Grouped mode: wg = width, cg = channels (dense MXU matmuls).
    Block-diagonal mode: wg = 1, cg = channels*width (W (x) I weights).
    """
    t_idx = pl.program_id(1)
    lead = pad_al - pad                # static; tap k reads at lead + k*dilation
    inv_c = 1.0 / float(wg * cg)

    # First T-tile of every batch element: the causal halo is zeros.
    if pad > 0:
        @pl.when(t_idx == 0)
        def _():
            xbuf[:, 0:pad_al, :] = jnp.zeros((wg, pad_al, cg), compute_dtype)

    # Grid-invariant operands, hoisted out of the width-group loop.
    taps = [w_ref[k] for k in range(kw)]            # kw x (cg, cg)
    bias = aux_ref[0]                               # (wg, cg) f32
    gamma = aux_ref[1]
    beta = aux_ref[2]

    # Pass 1: causal dilated conv + bias + ReLU + residual per width group;
    # accumulate LayerNorm row sums.  y values stay VMEM-resident for pass 2/3.
    ys = []
    ln_sum = jnp.zeros((tq, 1), jnp.float32)
    for w in range(wg):
        x_w = x_ref[0, w]                                        # (tq, cg)
        # TODO(synk): on v5e, DMA the tile straight into xbuf (memory_space=pl.ANY)
        #             so this staging store stops competing for the single vst slot.
        xbuf[w, pad_al:pad_al + tq, :] = x_w.astype(compute_dtype)
        # kw MXU matmuls with f32 accumulation.  Tap offsets are static; the
        # non-8-aligned ones cost a shifted VMEM copy (acceptable, small).
        acc = jnp.dot(xbuf[w, lead:lead + tq, :], taps[0],
                      preferred_element_type=jnp.float32)
        for k in range(1, kw):
            off = lead + k * dilation
            acc = acc + jnp.dot(xbuf[w, off:off + tq, :], taps[k],
                                preferred_element_type=jnp.float32)
        acc = acc + bias[w:w + 1, :]                             # conv bias
        y_w = jnp.maximum(acc, 0.0) + x_w.astype(jnp.float32)    # ReLU + residual
        ys.append(y_w)
        ln_sum = ln_sum + jnp.sum(y_w, axis=-1, keepdims=True)
        if pad > 0:
            # Carry: last `pad` rows of this tile form the next tile's halo.
            # (Relies on the T grid axis being sequential -> "arbitrary".)
            xbuf[w, pad_al - pad:pad_al, :] = xbuf[w, pad_al + tq - pad:pad_al + tq, :]

    mean = ln_sum * inv_c                                        # (tq, 1)

    # Pass 2: two-pass (centered) variance — avoids E[y^2] - mean^2 cancellation.
    var_sum = jnp.zeros((tq, 1), jnp.float32)
    for w in range(wg):
        d = ys[w] - mean
        var_sum = var_sum + jnp.sum(d * d, axis=-1, keepdims=True)
    rstd = jax.lax.rsqrt(var_sum * inv_c + eps)                  # (tq, 1)

    # Pass 3: normalize, scale/shift, write back.  Rows beyond T in a partial
    # final tile hold undefined data but never contaminate valid rows (the conv
    # is causal and LN is per-row), and Pallas clamps their writeback.
    for w in range(wg):
        y_n = (ys[w] - mean) * rstd
        o_ref[0, w] = (y_n * gamma[w:w + 1, :] + beta[w:w + 1, :]).astype(o_ref.dtype)


def _tds_pallas_call(x4, weights, aux, *, kernel_width, dilation, eps, tq,
                     compute_dtype):
    """Core call.  x4: (B, wg, T, cg); returns the same shape/dtype."""
    B, wg, T, cg = x4.shape
    kw = kernel_width
    assert weights.shape == (kw, cg, cg)
    assert aux.shape == (3, wg, cg)
    pad = (kw - 1) * dilation
    pad_al = _round_up(pad, 8) if pad > 0 else 0

    x_isz = jnp.dtype(x4.dtype).itemsize
    c_isz = jnp.dtype(compute_dtype).itemsize
    vmem_cap = _vmem_capacity_bytes()
    budget = min(96 << 20, max(16 << 20, vmem_cap - (24 << 20)))
    tq = _choose_tq(tq, T=T, pad=pad, wg=wg, cg=cg, kw=kw, x_itemsize=x_isz,
                    out_itemsize=x_isz, compute_itemsize=c_isz,
                    budget_bytes=budget)
    assert pad == 0 or tq >= pad, "halo must fit within one previous tile"
    n_t = pl.cdiv(T, tq)
    est_bytes = _estimate_vmem_bytes(tq, wg=wg, cg=cg, kw=kw, pad=pad,
                                     x_itemsize=x_isz, out_itemsize=x_isz,
                                     compute_itemsize=c_isz)
    vmem_limit = int(min(vmem_cap, max(est_bytes + (8 << 20), 32 << 20)))

    kernel = functools.partial(
        _tds_block_kernel, kw=kw, dilation=dilation, tq=tq, wg=wg, cg=cg,
        pad=pad, pad_al=pad_al, eps=eps, compute_dtype=compute_dtype)

    def run(single_buffer_invariants):
        def const_spec(shape):
            rank = len(shape)
            imap = lambda b, t: (0,) * rank
            if single_buffer_invariants and hasattr(pl, "Buffered"):
                # Grid-invariant operand: fetched once, no double buffer.
                return pl.BlockSpec(shape, imap, pipeline_mode=pl.Buffered(1))
            return pl.BlockSpec(shape, imap)

        return pl.pallas_call(
            kernel,
            out_shape=jax.ShapeDtypeStruct((B, wg, T, cg), x4.dtype),
            grid_spec=pltpu.PrefetchScalarGridSpec(
                num_scalar_prefetch=0,
                grid=(B, n_t),
                in_specs=[
                    pl.BlockSpec((1, wg, tq, cg), lambda b, t: (b, 0, t, 0)),
                    const_spec((kw, cg, cg)),
                    const_spec((3, wg, cg)),
                ],
                out_specs=pl.BlockSpec((1, wg, tq, cg), lambda b, t: (b, 0, t, 0)),
                scratch_shapes=[pltpu.VMEM((wg, pad_al + tq, cg), compute_dtype)],
            ),
            compiler_params=pltpu.CompilerParams(
                # T carries the causal halo in xbuf -> must stay sequential
                # ("arbitrary"); B is independent ("parallel", megacore-shardable).
                dimension_semantics=("parallel", "arbitrary"),
                vmem_limit_bytes=vmem_limit),
        )(x4, weights, aux)

    try:
        return run(True)
    except Exception:
        # Fallback for jax versions without BlockSpec(pipeline_mode=...).
        return run(False)


def _prep_params(conv_w, conv_b, ln_gamma, ln_beta, *, channels, width, mode,
                 compute_dtype):
    """Weights (kw, cg, cg) + fused aux (3, wg, cg) in width-major feature order."""
    kw = conv_w.shape[-1]
    wk = jnp.transpose(conv_w[:, :, 0, :], (2, 1, 0))            # (kw, ci, co)
    gamma_wc = jnp.transpose(ln_gamma.reshape(channels, width))  # (width, channels)
    beta_wc = jnp.transpose(ln_beta.reshape(channels, width))
    bias_wc = jnp.broadcast_to(conv_b[None, :], (width, channels))
    aux = jnp.stack([bias_wc, gamma_wc, beta_wc]).astype(jnp.float32)
    if mode == "grouped":
        return wk.astype(compute_dtype), aux, width, channels
    # Block-diagonal expansion, width-major lane order:
    #   M[k, w*channels + ci, v*channels + co] = wk[k, ci, co] * (w == v)
    c_total = channels * width
    eye_w = jnp.eye(width, dtype=wk.dtype)
    m = jnp.einsum('kio,wv->kwivo', wk, eye_w).reshape(kw, c_total, c_total)
    return m.astype(compute_dtype), aux.reshape(3, 1, c_total), 1, c_total


def tds_conv2d_block_causal_tmajor(x_wtc, conv_w, conv_b, ln_gamma, ln_beta, *,
                                   channels, width, kernel_width, dilation=1,
                                   eps=1e-5, tq=None, compute_dtype=jnp.bfloat16):
    """Time-major entry: x_wtc is (B, width, T, channels); zero wrapper transposes.

    Uses the grouped (MXU-dense) path where each tap is a
    (tq, channels)@(channels, channels) matmul; intended for channels >= ~128.
    """
    B, W, T, Ch = x_wtc.shape
    assert (W, Ch) == (width, channels)
    weights, aux, _, _ = _prep_params(conv_w, conv_b, ln_gamma, ln_beta,
                                      channels=channels, width=width,
                                      mode="grouped", compute_dtype=compute_dtype)
    return _tds_pallas_call(x_wtc, weights, aux, kernel_width=kernel_width,
                            dilation=dilation, eps=eps, tq=tq,
                            compute_dtype=compute_dtype)


def tds_conv2d_block_causal(x_bct, conv_w, conv_b, ln_gamma, ln_beta, *,
                            channels, width, kernel_width, dilation=1, eps=1e-5,
                            tq=None, compute_dtype=jnp.bfloat16, mode=None):
    """Pallas implementation of TDSConv2dBlockCausal.forward.

    x_bct  : (B, C, T) with C == channels * width   (PyTorch layout)
    conv_w : (channels, channels, 1, kernel_width)
    conv_b : (channels,)
    ln_gamma, ln_beta : (C,)
    returns: (B, C, T), same dtype as x_bct.

    Exactly one XLA transpose is used each way at the module boundary; models
    that keep activations time-major should call tds_conv2d_block_causal_tmajor
    and skip both.
    """
    B, C, T = x_bct.shape
    assert C == channels * width
    if mode is None:
        # Grouped removes width x FLOP / width^2 x weight-VMEM waste for large
        # channels; block-diag keeps MXU lanes full when channels is small.
        mode = "grouped" if channels >= 128 else "blockdiag"
    assert mode in ("grouped", "blockdiag")
    weights, aux, _, _ = _prep_params(conv_w, conv_b, ln_gamma, ln_beta,
                                      channels=channels, width=width,
                                      mode=mode, compute_dtype=compute_dtype)
    x4d = x_bct.reshape(B, channels, width, T)
    if mode == "grouped":
        x_core = jnp.transpose(x4d, (0, 2, 3, 1))                       # (B,w,T,ch)
    else:
        x_core = jnp.transpose(x4d, (0, 3, 2, 1)).reshape(B, 1, T, C)   # w-major lanes
    out = _tds_pallas_call(x_core, weights, aux, kernel_width=kernel_width,
                           dilation=dilation, eps=eps, tq=tq,
                           compute_dtype=compute_dtype)
    if mode == "grouped":
        return jnp.transpose(out, (0, 3, 1, 2)).reshape(B, C, T)
    return jnp.transpose(out.reshape(B, T, width, channels),
                         (0, 3, 2, 1)).reshape(B, C, T)


def reference_forward(x_bct, conv_w, conv_b, ln_gamma, ln_beta, *,
                      channels, width, kernel_width, dilation=1, eps=1e-5):
    """Pure-JAX f32 reference mirroring the PyTorch module semantics."""
    B, C, T = x_bct.shape
    pad = (kernel_width - 1) * dilation
    x4 = x_bct.reshape(B, channels, width, T)
    x4p = jnp.pad(x4, ((0, 0), (0, 0), (0, 0), (pad, 0)))
    y = jnp.zeros((B, channels, width, T), jnp.float32) \
        + conv_b[None, :, None, None]
    for k in range(kernel_width):
        xs = x4p[..., k * dilation: k * dilation + T]
        y = y + jnp.einsum('oi,biwt->bowt', conv_w[:, :, 0, k], xs)
    y = jnp.maximum(y, 0.0).reshape(B, C, T) + x_bct
    yt = jnp.swapaxes(y, 1, 2)                                   # (B, T, C)
    mean = jnp.mean(yt, axis=-1, keepdims=True)
    var = jnp.mean(jnp.square(yt - mean), axis=-1, keepdims=True)
    yn = (yt - mean) / jnp.sqrt(var + eps)
    yn = yn * ln_gamma[None, None, :] + ln_beta[None, None, :]
    return jnp.swapaxes(yn, 1, 2)


if __name__ == "__main__":
    # Small, module-consistent shapes: input (B, C, T) with C = channels * width.
    # T=40 with tq=16 exercises multiple T-tiles, the carried causal halo, and a
    # partial final tile.
    B, channels, width, T = 2, 4, 8, 40
    kernel_width, dilation = 3, 2
    C = channels * width

    key = jax.random.PRNGKey(0)
    k_w, k_b, k_x = jax.random.split(key, 3)

    fan_in = channels * kernel_width
    conv_w = jax.random.normal(
        k_w, (channels, channels, 1, kernel_width), jnp.float32) / jnp.sqrt(fan_in)
    conv_b = 0.1 * jax.random.normal(k_b, (channels,), jnp.float32)
    ln_gamma = jnp.ones((C,), jnp.float32)   # PyTorch LayerNorm default init
    ln_beta = jnp.zeros((C,), jnp.float32)

    x = jax.random.normal(k_x, (B, C, T), jnp.float32)           # (B, C, T)

    ref = jax.block_until_ready(reference_forward(
        x, conv_w, conv_b, ln_gamma, ln_beta,
        channels=channels, width=width,
        kernel_width=kernel_width, dilation=dilation))

    # 1) block-diagonal path (auto-selected for channels < 128), f32 compute.
    out_bd = jax.block_until_ready(tds_conv2d_block_causal(
        x, conv_w, conv_b, ln_gamma, ln_beta,
        channels=channels, width=width, kernel_width=kernel_width,
        dilation=dilation, tq=16, compute_dtype=jnp.float32))
    assert out_bd.shape == (B, C, T)
    err = float(jnp.max(jnp.abs(out_bd - ref)))
    assert err < 1e-3, f"blockdiag f32 max abs err {err}"

    # 2) grouped (re-layout) path, f32 compute: exercises the MXU-dense path.
    out_gr = jax.block_until_ready(tds_conv2d_block_causal(
        x, conv_w, conv_b, ln_gamma, ln_beta,
        channels=channels, width=width, kernel_width=kernel_width,
        dilation=dilation, tq=16, compute_dtype=jnp.float32, mode="grouped"))
    err = float(jnp.max(jnp.abs(out_gr - ref)))
    assert err < 1e-3, f"grouped f32 max abs err {err}"

    # 3) bf16 activations at the boundary + bf16 matmul operands (f32 accum).
    x_bf16 = x.astype(jnp.bfloat16)
    ref_bf = jax.block_until_ready(reference_forward(
        x_bf16.astype(jnp.float32), conv_w, conv_b, ln_gamma, ln_beta,
        channels=channels, width=width,
        kernel_width=kernel_width, dilation=dilation))
    out_bf = jax.block_until_ready(tds_conv2d_block_causal(
        x_bf16, conv_w, conv_b, ln_gamma, ln_beta,
        channels=channels, width=width, kernel_width=kernel_width,
        dilation=dilation))
    assert out_bf.shape == (B, C, T) and out_bf.dtype == jnp.bfloat16
    err = float(jnp.max(jnp.abs(out_bf.astype(jnp.float32) - ref_bf)))
    assert err < 6e-2, f"bf16 max abs err {err}"

    print("KERNEL_OK")
</pallas_src>

<mosaic_0001>
module attributes {stable_mosaic.version = 11 : i64} {
  func.func @_tds_block_kernel(%arg0: i32, %arg1: i32, %arg2: memref<1x1x16x32xf32, #tpu.memory_space<vmem>>, %arg3: memref<3x32x32xf32, #tpu.memory_space<vmem>>, %arg4: memref<3x1x32xf32, #tpu.memory_space<vmem>>, %arg5: memref<1x1x16x32xf32, #tpu.memory_space<vmem>>, %arg6: memref<1x24x32xf32, #tpu.memory_space<vmem>>) attributes {dimension_semantics = [#tpu.dimension_semantics<parallel>, #tpu.dimension_semantics<arbitrary>], iteration_bounds = array<i64: 2, 3>, scalar_prefetch = 0 : i64, scratch_operands = 1 : i64, tpu.core_type = #tpu.core_type<tc>, window_params = [{transform_indices = @transform_0, window_bounds = array<i64: 1, 1, 16, 32>}, {pipeline_mode = #tpu.pipeline_mode<synchronous>, transform_indices = @transform_1, window_bounds = array<i64: 3, 32, 32>}, {pipeline_mode = #tpu.pipeline_mode<synchronous>, transform_indices = @transform_2, window_bounds = array<i64: 3, 1, 32>}, {transform_indices = @transform_3, window_bounds = array<i64: 1, 1, 16, 32>}]} {
    %c0_i32 = arith.constant 0 : i32
    %0 = arith.cmpi eq, %arg1, %c0_i32 : i32
    %1 = arith.extui %0 : i1 to i32
    %c0_i32_0 = arith.constant 0 : i32
    %2 = arith.cmpi ne, %1, %c0_i32_0 : i32
    scf.if %2 {
      %cst_48 = arith.constant 0.000000e+00 : f32
      %70 = vector.broadcast %cst_48 : f32 to vector<1x8x32xf32>
      %c0_49 = arith.constant 0 : index
      %c0_50 = arith.constant 0 : index
      %c0_51 = arith.constant 0 : index
      %71 = vector.load %arg6[%c0_49, %c0_50, %c0_51] : memref<1x24x32xf32, #tpu.memory_space<vmem>>, vector<1x8x32xf32>
      tpu.vector_store %arg6[%c0_49, %c0_50, %c0_51], %70 {strides = array<i32>} : memref<1x24x32xf32, #tpu.memory_space<vmem>>, vector<1x8x32xf32>,
    } else {
    }
    %c0 = arith.constant 0 : index
    %c0_1 = arith.constant 0 : index
    %c0_2 = arith.constant 0 : index
    %3 = vector.load %arg3[%c0, %c0_1, %c0_2] : memref<3x32x32xf32, #tpu.memory_space<vmem>>, vector<1x32x32xf32>
    %4 = vector.shape_cast %3 : vector<1x32x32xf32> to vector<32x32xf32>
    %c1 = arith.constant 1 : index
    %c0_3 = arith.constant 0 : index
    %c0_4 = arith.constant 0 : index
    %5 = vector.load %arg3[%c1, %c0_3, %c0_4] : memref<3x32x32xf32, #tpu.memory_space<vmem>>, vector<1x32x32xf32>
    %6 = vector.shape_cast %5 : vector<1x32x32xf32> to vector<32x32xf32>
    %c2 = arith.constant 2 : index
    %c0_5 = arith.constant 0 : index
    %c0_6 = arith.constant 0 : index
    %7 = vector.load %arg3[%c2, %c0_5, %c0_6] : memref<3x32x32xf32, #tpu.memory_space<vmem>>, vector<1x32x32xf32>
    %8 = vector.shape_cast %7 : vector<1x32x32xf32> to vector<32x32xf32>
    %c0_7 = arith.constant 0 : index
    %c0_8 = arith.constant 0 : index
    %c0_9 = arith.constant 0 : index
    %9 = vector.load %arg4[%c0_7, %c0_8, %c0_9] : memref<3x1x32xf32, #tpu.memory_space<vmem>>, vector<1x1x32xf32>
    %10 = vector.shape_cast %9 : vector<1x1x32xf32> to vector<1x32xf32>
    %c1_10 = arith.constant 1 : index
    %c0_11 = arith.constant 0 : index
    %c0_12 = arith.constant 0 : index
    %11 = vector.load %arg4[%c1_10, %c0_11, %c0_12] : memref<3x1x32xf32, #tpu.memory_space<vmem>>, vector<1x1x32xf32>
    %12 = vector.shape_cast %11 : vector<1x1x32xf32> to vector<1x32xf32>
    %c2_13 = arith.constant 2 : index
    %c0_14 = arith.constant 0 : index
    %c0_15 = arith.constant 0 : index
    %13 = vector.load %arg4[%c2_13, %c0_14, %c0_15] : memref<3x1x32xf32, #tpu.memory_space<vmem>>, vector<1x1x32xf32>
    %14 = vector.shape_cast %13 : vector<1x1x32xf32> to vector<1x32xf32>
    %cst = arith.constant 0.000000e+00 : f32
    %15 = vector.broadcast %cst : f32 to vector<16x1xf32>
    %c0_16 = arith.constant 0 : index
    %c0_17 = arith.constant 0 : index
    %c0_18 = arith.constant 0 : index
    %c0_19 = arith.constant 0 : index
    %16 = vector.load %arg2[%c0_16, %c0_17, %c0_18, %c0_19] : memref<1x1x16x32xf32, #tpu.memory_space<vmem>>, vector<1x1x16x32xf32>
    %17 = vector.shape_cast %16 : vector<1x1x16x32xf32> to vector<16x32xf32>
    %c0_20 = arith.constant 0 : index
    %c8 = arith.constant 8 : index
    %c0_21 = arith.constant 0 : index
    %18 = vector.load %arg6[%c0_20, %c8, %c0_21] : memref<1x24x32xf32, #tpu.memory_space<vmem>>, vector<1x16x32xf32>
    %19 = vector.shape_cast %18 : vector<1x16x32xf32> to vector<16x32xf32>
    %20 = vector.shape_cast %17 : vector<16x32xf32> to vector<1x16x32xf32>
    tpu.vector_store %arg6[%c0_20, %c8, %c0_21], %20 {strides = array<i32>} : memref<1x24x32xf32, #tpu.memory_space<vmem>>, vector<1x16x32xf32>,
    %c0_22 = arith.constant 0 : index
    %c4 = arith.constant 4 : index
    %c0_23 = arith.constant 0 : index
    %21 = vector.load %arg6[%c0_22, %c4, %c0_23] : memref<1x24x32xf32, #tpu.memory_space<vmem>>, vector<1x16x32xf32>
    %22 = vector.shape_cast %21 : vector<1x16x32xf32> to vector<16x32xf32>
    %cst_24 = arith.constant dense<0.000000e+00> : vector<16x32xf32>
    %23 = tpu.matmul %22, %4, %cst_24 {dimension_numbers = #tpu.dot_dimension_numbers<[1], [0], [0], [1], [0, 0, 1, 1], [], []>} : vector<16x32xf32>, vector<32x32xf32>, vector<16x32xf32> -> vector<16x32xf32>
    %c0_25 = arith.constant 0 : index
    %c6 = arith.constant 6 : index
    %c0_26 = arith.constant 0 : index
    %24 = vector.load %arg6[%c0_25, %c6, %c0_26] : memref<1x24x32xf32, #tpu.memory_space<vmem>>, vector<1x16x32xf32>
    %25 = vector.shape_cast %24 : vector<1x16x32xf32> to vector<16x32xf32>
    %cst_27 = arith.constant dense<0.000000e+00> : vector<16x32xf32>
    %26 = tpu.matmul %25, %6, %cst_27 {dimension_numbers = #tpu.dot_dimension_numbers<[1], [0], [0], [1], [0, 0, 1, 1], [], []>} : vector<16x32xf32>, vector<32x32xf32>, vector<16x32xf32> -> vector<16x32xf32>
    %27 = arith.addf %23, %26 : vector<16x32xf32>
    %c0_28 = arith.constant 0 : index
    %c8_29 = arith.constant 8 : index
    %c0_30 = arith.constant 0 : index
    %28 = vector.load %arg6[%c0_28, %c8_29, %c0_30] : memref<1x24x32xf32, #tpu.memory_space<vmem>>, vector<1x16x32xf32>
    %29 = vector.shape_cast %28 : vector<1x16x32xf32> to vector<16x32xf32>
    %cst_31 = arith.constant dense<0.000000e+00> : vector<16x32xf32>
    %30 = tpu.matmul %29, %8, %cst_31 {dimension_numbers = #tpu.dot_dimension_numbers<[1], [0], [0], [1], [0, 0, 1, 1], [], []>} : vector<16x32xf32>, vector<32x32xf32>, vector<16x32xf32> -> vector<16x32xf32>
    %31 = arith.addf %27, %30 : vector<16x32xf32>
    %32 = vector.broadcast %10 : vector<1x32xf32> to vector<16x32xf32>
    %33 = arith.addf %31, %32 : vector<16x32xf32>
    %cst_32 = arith.constant 0.000000e+00 : f32
    %34 = vector.broadcast %cst_32 : f32 to vector<16x32xf32>
    %35 = arith.maximumf %33, %34 : vector<16x32xf32>
    %36 = arith.addf %35, %17 : vector<16x32xf32>
    %cst_33 = arith.constant dense<0.000000e+00> : vector<16xf32>
    %37 = vector.multi_reduction <add>, %36, %cst_33 [1] : vector<16x32xf32> to vector<16xf32>
    %38 = vector.shape_cast %37 : vector<16xf32> to vector<16x1xf32>
    %39 = arith.addf %15, %38 : vector<16x1xf32>
    %c0_34 = arith.constant 0 : index
    %c20 = arith.constant 20 : index
    %c0_35 = arith.constant 0 : index
    %40 = vector.load %arg6[%c0_34, %c20, %c0_35] : memref<1x24x32xf32, #tpu.memory_space<vmem>>, vector<1x4x32xf32>
    %41 = vector.shape_cast %40 : vector<1x4x32xf32> to vector<4x32xf32>
    %c0_36 = arith.constant 0 : index
    %c4_37 = arith.constant 4 : index
    %c0_38 = arith.constant 0 : index
    %42 = vector.load %arg6[%c0_36, %c4_37, %c0_38] : memref<1x24x32xf32, #tpu.memory_space<vmem>>, vector<1x4x32xf32>
    %43 = vector.shape_cast %42 : vector<1x4x32xf32> to vector<4x32xf32>
    %44 = vector.shape_cast %41 : vector<4x32xf32> to vector<1x4x32xf32>
    tpu.vector_store %arg6[%c0_36, %c4_37, %c0_38], %44 {strides = array<i32>} : memref<1x24x32xf32, #tpu.memory_space<vmem>>, vector<1x4x32xf32>,
    %cst_39 = arith.constant 3.125000e-02 : f32
    %45 = vector.broadcast %cst_39 : f32 to vector<16x1xf32>
    %46 = arith.mulf %39, %45 : vector<16x1xf32>
    %cst_40 = arith.constant 0.000000e+00 : f32
    %47 = vector.broadcast %cst_40 : f32 to vector<16x1xf32>
    %48 = vector.broadcast %46 : vector<16x1xf32> to vector<16x32xf32>
    %49 = arith.subf %36, %48 : vector<16x32xf32>
    %50 = arith.mulf %49, %49 : vector<16x32xf32>
    %cst_41 = arith.constant dense<0.000000e+00> : vector<16xf32>
    %51 = vector.multi_reduction <add>, %50, %cst_41 [1] : vector<16x32xf32> to vector<16xf32>
    %52 = vector.shape_cast %51 : vector<16xf32> to vector<16x1xf32>
    %53 = arith.addf %47, %52 : vector<16x1xf32>
    %cst_42 = arith.constant 3.125000e-02 : f32
    %54 = vector.broadcast %cst_42 : f32 to vector<16x1xf32>
    %55 = arith.mulf %53, %54 : vector<16x1xf32>
    %cst_43 = arith.constant 9.99999974E-6 : f32
    %56 = vector.broadcast %cst_43 : f32 to vector<16x1xf32>
    %57 = arith.addf %55, %56 : vector<16x1xf32>
    %58 = math.rsqrt %57 : vector<16x1xf32>
    %59 = vector.broadcast %46 : vector<16x1xf32> to vector<16x32xf32>
    %60 = arith.subf %36, %59 : vector<16x32xf32>
    %61 = vector.broadcast %58 : vector<16x1xf32> to vector<16x32xf32>
    %62 = arith.mulf %60, %61 : vector<16x32xf32>
    %63 = vector.broadcast %12 : vector<1x32xf32> to vector<16x32xf32>
    %64 = arith.mulf %62, %63 : vector<16x32xf32>
    %65 = vector.broadcast %14 : vector<1x32xf32> to vector<16x32xf32>
    %66 = arith.addf %64, %65 : vector<16x32xf32>
    %c0_44 = arith.constant 0 : index
    %c0_45 = arith.constant 0 : index
    %c0_46 = arith.constant 0 : index
    %c0_47 = arith.constant 0 : index
    %67 = vector.load %arg5[%c0_44, %c0_45, %c0_46, %c0_47] : memref<1x1x16x32xf32, #tpu.memory_space<vmem>>, vector<1x1x16x32xf32>
    %68 = vector.shape_cast %67 : vector<1x1x16x32xf32> to vector<16x32xf32>
    %69 = vector.shape_cast %66 : vector<16x32xf32> to vector<1x1x16x32xf32>
    tpu.vector_store %arg5[%c0_44, %c0_45, %c0_46, %c0_47], %69 {strides = array<i32>} : memref<1x1x16x32xf32, #tpu.memory_space<vmem>>, vector<1x1x16x32xf32>,
    return
  }
  func.func @transform_0(%arg0: i32, %arg1: i32) -> (i32, i32, i32, i32) {
    %c0_i32 = arith.constant 0 : i32
    %c0_i32_0 = arith.constant 0 : i32
    %c0_i32_1 = arith.constant 0 : i32
    return %arg0, %c0_i32, %arg1, %c0_i32_0 : i32, i32, i32, i32
  }
  func.func @transform_1(%arg0: i32, %arg1: i32) -> (i32, i32, i32) {
    %c0_i32 = arith.constant 0 : i32
    %c0_i32_0 = arith.constant 0 : i32
    %c0_i32_1 = arith.constant 0 : i32
    %c0_i32_2 = arith.constant 0 : i32
    return %c0_i32, %c0_i32_0, %c0_i32_1 : i32, i32, i32
  }
  func.func @transform_2(%arg0: i32, %arg1: i32) -> (i32, i32, i32) {
    %c0_i32 = arith.constant 0 : i32
    %c0_i32_0 = arith.constant 0 : i32
    %c0_i32_1 = arith.constant 0 : i32
    %c0_i32_2 = arith.constant 0 : i32
    return %c0_i32, %c0_i32_0, %c0_i32_1 : i32, i32, i32
  }
  func.func @transform_3(%arg0: i32, %arg1: i32) -> (i32, i32, i32, i32) {
    %c0_i32 = arith.constant 0 : i32
    %c0_i32_0 = arith.constant 0 : i32
    %c0_i32_1 = arith.constant 0 : i32
    return %arg0, %c0_i32, %arg1, %c0_i32_0 : i32, i32, i32, i32
  }
}

module attributes {stable_mosaic.version = 11 : i64} {
  func.func @_tds_block_kernel(%arg0: i32, %arg1: i32, %arg2: memref<1x1x16x32xf32, #tpu.memory_space<vmem>>, %arg3: memref<3x32x32xf32, #tpu.memory_space<vmem>>, %arg4: memref<3x1x32xf32, #tpu.memory_space<vmem>>, %arg5: memref<1x1x16x32xf32, #tpu.memory_space<vmem>>, %arg6: memref<1x24x32xf32, #tpu.memory_space<vmem>>) attributes {dimension_semantics = [#tpu.dimension_semantics<parallel>, #tpu.dimension_semantics<arbitrary>], iteration_bounds = array<i64: 2, 3>, scalar_prefetch = 0 : i64, scratch_operands = 1 : i64, tpu.core_type = #tpu.core_type<tc>, window_params = [{transform_indices = @transform_0, window_bounds = array<i64: 1, 1, 16, 32>}, {pipeline_mode = #tpu.pipeline_mode<synchronous>, transform_indices = @transform_1, window_bounds = array<i64: 3, 32, 32>}, {pipeline_mode = #tpu.pipeline_mode<synchronous>, transform_indices = @transform_2, window_bounds = array<i64: 3, 1, 32>}, {transform_indices = @transform_3, window_bounds = array<i64: 1, 1, 16, 32>}]} {
    %c0_i32 = arith.constant 0 : i32
    %0 = arith.cmpi eq, %arg1, %c0_i32 : i32
    %1 = arith.extui %0 : i1 to i32
    %c0_i32_0 = arith.constant 0 : i32
    %2 = arith.cmpi ne, %1, %c0_i32_0 : i32
    scf.if %2 {
      %cst_48 = arith.constant 0.000000e+00 : f32
      %70 = vector.broadcast %cst_48 : f32 to vector<1x8x32xf32>
      %c0_49 = arith.constant 0 : index
      %c0_50 = arith.constant 0 : index
      %c0_51 = arith.constant 0 : index
      %71 = vector.load %arg6[%c0_49, %c0_50, %c0_51] : memref<1x24x32xf32, #tpu.memory_space<vmem>>, vector<1x8x32xf32>
      tpu.vector_store %arg6[%c0_49, %c0_50, %c0_51], %70 {strides = array<i32>} : memref<1x24x32xf32, #tpu.memory_space<vmem>>, vector<1x8x32xf32>,
    } else {
    }
    %c0 = arith.constant 0 : index
    %c0_1 = arith.constant 0 : index
    %c0_2 = arith.constant 0 : index
    %3 = vector.load %arg3[%c0, %c0_1, %c0_2] : memref<3x32x32xf32, #tpu.memory_space<vmem>>, vector<1x32x32xf32>
    %4 = vector.shape_cast %3 : vector<1x32x32xf32> to vector<32x32xf32>
    %c1 = arith.constant 1 : index
    %c0_3 = arith.constant 0 : index
    %c0_4 = arith.constant 0 : index
    %5 = vector.load %arg3[%c1, %c0_3, %c0_4] : memref<3x32x32xf32, #tpu.memory_space<vmem>>, vector<1x32x32xf32>
    %6 = vector.shape_cast %5 : vector<1x32x32xf32> to vector<32x32xf32>
    %c2 = arith.constant 2 : index
    %c0_5 = arith.constant 0 : index
    %c0_6 = arith.constant 0 : index
    %7 = vector.load %arg3[%c2, %c0_5, %c0_6] : memref<3x32x32xf32, #tpu.memory_space<vmem>>, vector<1x32x32xf32>
    %8 = vector.shape_cast %7 : vector<1x32x32xf32> to vector<32x32xf32>
    %c0_7 = arith.constant 0 : index
    %c0_8 = arith.constant 0 : index
    %c0_9 = arith.constant 0 : index
    %9 = vector.load %arg4[%c0_7, %c0_8, %c0_9] : memref<3x1x32xf32, #tpu.memory_space<vmem>>, vector<1x1x32xf32>
    %10 = vector.shape_cast %9 : vector<1x1x32xf32> to vector<1x32xf32>
    %c1_10 = arith.constant 1 : index
    %c0_11 = arith.constant 0 : index
    %c0_12 = arith.constant 0 : index
    %11 = vector.load %arg4[%c1_10, %c0_11, %c0_12] : memref<3x1x32xf32, #tpu.memory_space<vmem>>, vector<1x1x32xf32>
    %12 = vector.shape_cast %11 : vector<1x1x32xf32> to vector<1x32xf32>
    %c2_13 = arith.constant 2 : index
    %c0_14 = arith.constant 0 : index
    %c0_15 = arith.constant 0 : index
    %13 = vector.load %arg4[%c2_13, %c0_14, %c0_15] : memref<3x1x32xf32, #tpu.memory_space<vmem>>, vector<1x1x32xf32>
    %14 = vector.shape_cast %13 : vector<1x1x32xf32> to vector<1x32xf32>
    %cst = arith.constant 0.000000e+00 : f32
    %15 = vector.broadcast %cst : f32 to vector<16x1xf32>
    %c0_16 = arith.constant 0 : index
    %c0_17 = arith.constant 0 : index
    %c0_18 = arith.constant 0 : index
    %c0_19 = arith.constant 0 : index
    %16 = vector.load %arg2[%c0_16, %c0_17, %c0_18, %c0_19] : memref<1x1x16x32xf32, #tpu.memory_space<vmem>>, vector<1x1x16x32xf32>
    %17 = vector.shape_cast %16 : vector<1x1x16x32xf32> to vector<16x32xf32>
    %c0_20 = arith.constant 0 : index
    %c8 = arith.constant 8 : index
    %c0_21 = arith.constant 0 : index
    %18 = vector.load %arg6[%c0_20, %c8, %c0_21] : memref<1x24x32xf32, #tpu.memory_space<vmem>>, vector<1x16x32xf32>
    %19 = vector.shape_cast %18 : vector<1x16x32xf32> to vector<16x32xf32>
    %20 = vector.shape_cast %17 : vector<16x32xf32> to vector<1x16x32xf32>
    tpu.vector_store %arg6[%c0_20, %c8, %c0_21], %20 {strides = array<i32>} : memref<1x24x32xf32, #tpu.memory_space<vmem>>, vector<1x16x32xf32>,
    %c0_22 = arith.constant 0 : index
    %c4 = arith.constant 4 : index
    %c0_23 = arith.constant 0 : index
    %21 = vector.load %arg6[%c0_22, %c4, %c0_23] : memref<1x24x32xf32, #tpu.memory_space<vmem>>, vector<1x16x32xf32>
    %22 = vector.shape_cast %21 : vector<1x16x32xf32> to vector<16x32xf32>
    %cst_24 = arith.constant dense<0.000000e+00> : vector<16x32xf32>
    %23 = tpu.matmul %22, %4, %cst_24 {dimension_numbers = #tpu.dot_dimension_numbers<[1], [0], [0], [1], [0, 0, 1, 1], [], []>} : vector<16x32xf32>, vector<32x32xf32>, vector<16x32xf32> -> vector<16x32xf32>
    %c0_25 = arith.constant 0 : index
    %c6 = arith.constant 6 : index
    %c0_26 = arith.constant 0 : index
    %24 = vector.load %arg6[%c0_25, %c6, %c0_26] : memref<1x24x32xf32, #tpu.memory_space<vmem>>, vector<1x16x32xf32>
    %25 = vector.shape_cast %24 : vector<1x16x32xf32> to vector<16x32xf32>
    %cst_27 = arith.constant dense<0.000000e+00> : vector<16x32xf32>
    %26 = tpu.matmul %25, %6, %cst_27 {dimension_numbers = #tpu.dot_dimension_numbers<[1], [0], [0], [1], [0, 0, 1, 1], [], []>} : vector<16x32xf32>, vector<32x32xf32>, vector<16x32xf32> -> vector<16x32xf32>
    %27 = arith.addf %23, %26 : vector<16x32xf32>
    %c0_28 = arith.constant 0 : index
    %c8_29 = arith.constant 8 : index
    %c0_30 = arith.constant 0 : index
    %28 = vector.load %arg6[%c0_28, %c8_29, %c0_30] : memref<1x24x32xf32, #tpu.memory_space<vmem>>, vector<1x16x32xf32>
    %29 = vector.shape_cast %28 : vector<1x16x32xf32> to vector<16x32xf32>
    %cst_31 = arith.constant dense<0.000000e+00> : vector<16x32xf32>
    %30 = tpu.matmul %29, %8, %cst_31 {dimension_numbers = #tpu.dot_dimension_numbers<[1], [0], [0], [1], [0, 0, 1, 1], [], []>} : vector<16x32xf32>, vector<32x32xf32>, vector<16x32xf32> -> vector<16x32xf32>
    %31 = arith.addf %27, %30 : vector<16x32xf32>
    %32 = vector.broadcast %10 : vector<1x32xf32> to vector<16x32xf32>
    %33 = arith.addf %31, %32 : vector<16x32xf32>
    %cst_32 = arith.constant 0.000000e+00 : f32
    %34 = vector.broadcast %cst_32 : f32 to vector<16x32xf32>
    %35 = arith.maximumf %33, %34 : vector<16x32xf32>
    %36 = arith.addf %35, %17 : vector<16x32xf32>
    %cst_33 = arith.constant dense<0.000000e+00> : vector<16xf32>
    %37 = vector.multi_reduction <add>, %36, %cst_33 [1] : vector<16x32xf32> to vector<16xf32>
    %38 = vector.shape_cast %37 : vector<16xf32> to vector<16x1xf32>
    %39 = arith.addf %15, %38 : vector<16x1xf32>
    %c0_34 = arith.constant 0 : index
    %c20 = arith.constant 20 : index
    %c0_35 = arith.constant 0 : index
    %40 = vector.load %arg6[%c0_34, %c20, %c0_35] : memref<1x24x32xf32, #tpu.memory_space<vmem>>, vector<1x4x32xf32>
    %41 = vector.shape_cast %40 : vector<1x4x32xf32> to vector<4x32xf32>
    %c0_36 = arith.constant 0 : index
    %c4_37 = arith.constant 4 : index
    %c0_38 = arith.constant 0 : index
    %42 = vector.load %arg6[%c0_36, %c4_37, %c0_38] : memref<1x24x32xf32, #tpu.memory_space<vmem>>, vector<1x4x32xf32>
    %43 = vector.shape_cast %42 : vector<1x4x32xf32> to vector<4x32xf32>
    %44 = vector.shape_cast %41 : vector<4x32xf32> to vector<1x4x32xf32>
    tpu.vector_store %arg6[%c0_36, %c4_37, %c0_38], %44 {strides = array<i32>} : memref<1x24x32xf32, #tpu.memory_space<vmem>>, vector<1x4x32xf32>,
    %cst_39 = arith.constant 3.125000e-02 : f32
    %45 = vector.broadcast %cst_39 : f32 to vector<16x1xf32>
    %46 = arith.mulf %39, %45 : vector<16x1xf32>
    %cst_40 = arith.constant 0.000000e+00 : f32
    %47 = vector.broadcast %cst_40 : f32 to vector<16x1xf32>
    %48 = vector.broadcast %46 : vector<16x1xf32> to vector<16x32xf32>
    %49 = arith.subf %36, %48 : vector<16x32xf32>
    %50 = arith.mulf %49, %49 : vector<16x32xf32>
    %cst_41 = arith.constant dense<0.000000e+00> : vector<16xf32>
    %51 = vector.multi_reduction <add>, %50, %cst_41 [1] : vector<16x32xf32> to vector<16xf32>
    %52 = vector.shape_cast %51 : vector<16xf32> to vector<16x1xf32>
    %53 = arith.addf %47, %52 : vector<16x1xf32>
    %cst_42 = arith.constant 3.125000e-02 : f32
    %54 = vector.broadcast %cst_42 : f32 to vector<16x1xf32>
    %55 = arith.mulf %53, %54 : vector<16x1xf32>
    %cst_43 = arith.constant 9.99999974E-6 : f32
    %56 = vector.broadcast %cst_43 : f32 to vector<16x1xf32>
    %57 = arith.addf %55, %56 : vector<16x1xf32>
    %58 = math.rsqrt %57 : vector<16x1xf32>
    %59 = vector.broadcast %46 : vector<16x1xf32> to vector<16x32xf32>
    %60 = arith.subf %36, %59 : vector<16x32xf32>
    %61 = vector.broadcast %58 : vector<16x1xf32> to vector<16x32xf32>
    %62 = arith.mulf %60, %61 : vector<16x32xf32>
    %63 = vector.broadcast %12 : vector<1x32xf32> to vector<16x32xf32>
    %64 = arith.mulf %62, %63 : vector<16x32xf32>
    %65 = vector.broadcast %14 : vector<1x32xf32> to vector<16x32xf32>
    %66 = arith.addf %64, %65 : vector<16x32xf32>
    %c0_44 = arith.constant 0 : index
    %c0_45 = arith.constant 0 : index
    %c0_46 = arith.constant 0 : index
    %c0_47 = arith.constant 0 : index
    %67 = vector.load %arg5[%c0_44, %c0_45, %c0_46, %c0_47] : memref<1x1x16x32xf32, #tpu.memory_space<vmem>>, vector<1x1x16x32xf32>
    %68 = vector.shape_cast %67 : vector<1x1x16x32xf32> to vector<16x32xf32>
    %69 = vector.shape_cast %66 : vector<16x32xf32> to vector<1x1x16x32xf32>
    tpu.vector_store %arg5[%c0_44, %c0_45, %c0_46, %c0_47], %69 {strides = array<i32>} : memref<1x1x16x32xf32, #tpu.memory_space<vmem>>, vector<1x1x16x32xf32>,
    return
  }
  func.func @transform_0(%arg0: i32, %arg1: i32) -> (i32, i32, i32, i32) {
    %c0_i32 = arith.constant 0 : i32
    %c0_i32_0 = arith.constant 0 : i32
    %c0_i32_1 = arith.constant 0 : i32
    return %arg0, %c0_i32, %arg1, %c0_i32_0 : i32, i32, i32, i32
  }
  func.func @transform_1(%arg0: i32, %arg1: i32) -> (i32, i32, i32) {
    %c0_i32 = arith.constant 0 : i32
    %c0_i32_0 = arith.constant 0 : i32
    %c0_i32_1 = arith.constant 0 : i32
    %c0_i32_2 = arith.constant 0 : i32
    return %c0_i32, %c0_i32_0, %c0_i32_1 : i32, i32, i32
  }
  func.func @transform_2(%arg0: i32, %arg1: i32) -> (i32, i32, i32) {
    %c0_i32 = arith.constant 0 : i32
    %c0_i32_0 = arith.constant 0 : i32
    %c0_i32_1 = arith.constant 0 : i32
    %c0_i32_2 = arith.constant 0 : i32
    return %c0_i32, %c0_i32_0, %c0_i32_1 : i32, i32, i32
  }
  func.func @transform_3(%arg0: i32, %arg1: i32) -> (i32, i32, i32, i32) {
    %c0_i32 = arith.constant 0 : i32
    %c0_i32_0 = arith.constant 0 : i32
    %c0_i32_1 = arith.constant 0 : i32
    return %arg0, %c0_i32, %arg1, %c0_i32_0 : i32, i32, i32, i32
  }
}

</mosaic_0001>

<bundles_post_ra>
// kernel: tpu_custom_call.1
= control target key start
LH: loop header
LB: loop body
LE: loop exit
PB: predicated region body
PF: predicated region fallthrough
CT: control target
= control target key end

     0   :  { %s1172_s12 = smov 0   ;;  %s1174_s13 = smov 0   ;;  %s1359_s0 = inlined_call_operand.vmem [shape: f32[2,1,40,32], index: 0, kind: input, shape index: {}]   ;;  %s1360_s1 = inlined_call_operand.vmem [shape: f32[3,32,32], index: 1, kind: input, shape index: {}]   ;;  %s1361_s2 = inlined_call_operand.vmem [shape: f32[3,1,32], index: 2, kind: input, shape index: {}]   ;;  %s1362_s3 = inlined_call_operand.vmem [shape: f32[2,1,40,32], index: 3, kind: output, shape index: {}]  }
   0x1   :  { %s1176_s14 = smov 0   ;;  %s1178_s15 = smov 0  }
   0x2   :  { %s1180_s16 = smov 0   ;;  %s1182_s17 = smov 0  }
   0x3   :  { %s1184_s18 = smov 0  }
   0x4 LB: > { %s22_s19 = sadd.s32 1, %s1109_s16  ;;  %s25_s20 = sadd.s32 1, %s1113_s17  ;;  %s1117_s18 = sphi %s1184_s18, %s13_s18   ;;  %s1113_s17 = sphi %s1182_s17, %s1369_s17   ;;  %s1109_s16 = sphi %s1180_s16, %s1368_s16   ;;  %s1105_s15 = sphi %s1178_s15, %s1367_s15   ;;  %s1101_s14 = sphi %s1176_s14, %s1366_s14   ;;  %s1097_s13 = sphi %s1174_s13, %s1365_s13   ;;  %s1093_s12 = sphi %s1172_s12, %s1364_s12  }
   0x5   : > { %p23_p0 = scmp.ge.s32.totalorder %s22_s19, 3  ;;  %s806_s21 = sadd.s32 4294967295, %s1117_s18  }
   0x6   : > { %p114_p1 = scmp.ne.s32.totalorder %s1097_s13, %s1093_s12  ;;  %p115_p2 = scmp.eq.s32.totalorder %s806_s21, 5 }
   0x7   : > { %s1371_s19 = smov (%p23_p0, %s22_s19), 0  ;;  %s1373_s20 = smov (!%p23_p0, %s25_s20), %s1113_s17 }
   0x8   : > { %s100_s22 = ssub.s32 %s1109_s16, %s1371_s19  ;;  %p27_p3 = scmp.ge.s32.totalorder %s1373_s20, 2 }
   0x9   : > { %p810_p4 = scmp.ge.s32.totalorder %s1117_s18, 1  ;;  %p1218_p5 = por %p115_p2, %p114_p1 }
   0xa   : > { %p166_p6 = scmp.lt.s32.totalorder %s1117_s18, 7  ;;  %s1375_s20 = smov (%p27_p3, %s1373_s20), 0 }
   0xb   : > { %s99_s24 = ssub.s32 %s1113_s17, %s1375_s20  ;;  %s104_s26 = sadd.s32 1, %s1097_s13 }
   0xc   : > { %p167_p7 = pnand %p810_p4, %p166_p6  ;;  %s101_s25 = sor.u32 %s100_s22, %s99_s24 }
   0xd   : > { %p102_p8 = scmp.eq.s32.totalorder %s101_s25, 0  ;;  %s194_s28 = sand.u32 (!%p167_p7), 1, %s1093_s12  }
   0xe   : > { %170 = sbr.rel (%p167_p7) target bundleno = 604 (0x25c), region = 32  ;;  %s1233_s29 = sshll.u32 (!%p167_p7), %s1101_s14, 1 }
   0xf   : > { %s1229_s27 = scalar_select %p102_p8, %s1097_s13, %s104_s26  }
  0x10   : > { %s811_s30 = sshll.u32 (!%p167_p7), %s194_s28, 4  ;;  %p202_p9 = scmp.lt.s32.totalorder (!%p167_p7), %s1105_s15, 1 }
  0x11   : > { %p204_p10 = scmp.lt.s32.totalorder (!%p167_p7), %s1233_s29, 4  ;;  %s1242_s21 = scalar_lea.vmem (!%p167_p7), [#allocation3], %s811_s30  }
  0x12   : > { %p814_p11 = scmp.ne.s32.totalorder (!%p167_p7), %s1101_s14, 0 }
  0x13   : > { %s203_s4 = scalar_select %p202_p9, %s1105_s15, 1 }
  0x14   : > { %s205_s5 = scalar_select %p204_p10, %s1233_s29, 4 }
  0x15   : > { %s904_s6 = smul.u32 5, %s203_s4 }
  0x16   : > { %223 = sbr.rel (%p814_p11) target bundleno = 29 (0x1d), region = 36 }
  0x17   : > { %s207_s7 = sadd.s32 %s904_s6, %s205_s5 }
  0x18   : > { %s813_s8 = sshll.u32 %s207_s7, 3 }
  0x19   : > { %s209_s11 = scalar_lea.vmem %s1359_s0, %s813_s8 }
  0x1b   : > { %vm224_vm0 = vcmask 261120   ;;  %v1151_v0 = vmov 0.0  }
  0x1c   : > { %225 = vst.msk [vmem:[#allocation2] sm:$0xff] %vm224_vm0, %v1151_v0 }
  0x1d PF: > { %v818_v1 = vld [vmem:[%s1360_s1 + $0x38] sm:$0xff]  ;;  %v817_v3 = vld [vmem:[%s1360_s1 + $0x30] sm:$0xff]  ;;  %vm247_vm1 = vcmask 261120   ;;  %v816_v5 = vld [vmem:[%s1360_s1 + $0x28] sm:$0xff]  ;;  %vm522_vm2 = vcmask 257024   ;;  %s572_s10 = ssub.s32 (%p1218_p5), 5, %s1233_s29 }
  0x1e   : > { %v229_v2 = vld [vmem:[%s1360_s1 + $0x18] sm:$0xff]  ;;  %871 = vmatprep.subr.mxu0 %v818_v1  ;;  %v228_v4 = vld [vmem:[%s1360_s1 + $0x10] sm:$0xff]  ;;  %v227_v6 = vld [vmem:[%s1360_s1 + $0x8] sm:$0xff]  ;;  %s905_s12 = smul.u32 (%p1218_p5), 5, %s1105_s15  ;;  %p573_p12 = scmp.lt.s32.totalorder (%p1218_p5), %s572_s10, 2 }
  0x1f   : > { %882 = vmatprep.subr.mxu1 %v229_v2  ;;  %872 = vmatpush3.msra.mxu0 %v818_v1  ;;  %v245_v7 = vld [vmem:[%s209_s11] sm:$0xff]  ;;  %v246_v8 = vld [vmem:[%s209_s11 + $0x8] sm:$0xff]  ;;  %v822_v11 = vld [vmem:[%s1360_s1 + $0x58] sm:$0xff] }
  0x20   : > { %883 = vmatpush3.msra.mxu1 %v229_v2  ;;  %873 = vmatprep.subr.mxu0 %v817_v3  ;;  %248 = vst.msk [vmem:[#allocation2 + $0x8] sm:$0xff] %vm247_vm1, %v245_v7  ;;  %v815_v9 = vld [vmem:[%s1360_s1 + $0x20] sm:$0xff]  ;;  %249 = vst.msk [vmem:[#allocation2 + $0x10] sm:$0xff] %vm247_vm1, %v246_v8  ;;  %v821_v12 = vld [vmem:[%s1360_s1 + $0x50] sm:$0xff]  ;;  %s578_s22 = sadd.s32 (%p1218_p5), %s905_s12, %s1233_s29 }
  0x21   : > { %884 = vmatprep.subr.mxu1 %v228_v4  ;;  %874 = vmatpush3.msra.mxu0 %v817_v3  ;;  %v226_v10 = vld [vmem:[%s1360_s1] sm:$0xff]  ;;  %v820_v19 = vld [vmem:[%s1360_s1 + $0x48] sm:$0xff]  ;;  %s838_s24 = sshll.u32 (%p1218_p5), %s578_s22, 3 }
  0x22   : > { %885 = vmatpush3.msra.mxu1 %v228_v4  ;;  %875 = vmatprep.subr.mxu0 %v816_v5  ;;  %v819_v20 = vld [vmem:[%s1360_s1 + $0x40] sm:$0xff]  ;;  %s1317_s28 = scalar_lea.vmem (%p1218_p5), %s1362_s3, %s838_s24  }
  0x23   : > { %886 = vmatprep.subr.mxu1 %v227_v6  ;;  %876 = vmatpush3.msra.mxu0 %v816_v5  ;;  %v831_v27 = vld [vmem:[%s1361_s2] ss:$0 sm:$0xff]  ;;  %v832_v58 = vld [vmem:[%s1361_s2 + $0x1] ss:$0 sm:$0xff]  ;;  %v833_v60 = vld [vmem:[%s1361_s2 + $0x2] ss:$0 sm:$0xff] }
  0x24   : > { %887 = vmatpush3.msra.mxu1 %v227_v6  ;;  %877 = vmatprep.subr.mxu0 %v815_v9 }
  0x25   : > { %888 = vmatprep.subr.mxu1 %v226_v10  ;;  %878 = vmatpush3.msra.mxu0 %v815_v9 }
  0x26   : > { %889 = vmatpush3.msra.mxu1 %v226_v10  ;;  %893 = vmatprep.subr.mxu0 %v822_v11 }
  0x27   : > { %v252_v13 = vld [vmem:[#allocation2 + $0x6] sm:$0xff]  ;;  %v521_v16 = vld [vmem:[#allocation2 + $0x14] sm:$0xf] }
  0x28   : > { %v250_v14 = vld [vmem:[#allocation2 + $0x4] sm:$0xff]  ;;  %879 = vmatprep.mubr.msk.f32.mxu0 %vm247_vm1, %v252_v13  ;;  %v253_v17 = vld [vmem:[#allocation2 + $0xe] sm:$0xff] }
  0x29   : > { %v416_v15 = vld [vmem:[#allocation2 + $0x8] sm:$0xff]  ;;  %890 = vmatprep.mubr.msk.f32.mxu1 %vm247_vm1, %v250_v14  ;;  %523 = vst.msk [vmem:[#allocation2 + $0x4] sm:$0xf] %vm522_vm2, %v521_v16  ;;  %880 = vmatmul.mubr.msk.f32.vlgmr.msra.gmra.mxu0 %vm247_vm1, %v253_v17  ;;  %v417_v21 = vld [vmem:[#allocation2 + $0x10] sm:$0xff] }
  0x2a   : > { %v251_v18 = vld [vmem:[#allocation2 + $0xc] sm:$0xff]  ;;  %894 = vmatpush3.msra.mxu0 %v822_v11  ;;  %901 = vmatprep.mubr.msk.f32.mxu0 %vm247_vm1, %v416_v15 }
  0x2b   : > { %891 = vmatmul.mubr.msk.f32.vlgmr.msra.gmra.mxu1 %vm247_vm1, %v251_v18  ;;  %895 = vmatprep.subr.mxu0 %v821_v12 }
  0x2c   : > { %896 = vmatpush3.msra.mxu0 %v821_v12 }
  0x2d   : > { %897 = vmatprep.subr.mxu0 %v820_v19 }
  0x2e   : > { %898 = vmatpush3.msra.mxu0 %v820_v19 }
  0x2f   : > { %899 = vmatprep.subr.mxu0 %v819_v20 }
  0x30   : > { %900 = vmatpush3.msra.mxu0 %v819_v20 }
  0x31   : > { %902 = vmatmul.mubr.msk.f32.vlgmr.msra.gmra.mxu0 %vm247_vm1, %v417_v21 }
  0xe9   : > { %v881_v22 = vpop.f32.mrf.mxu0 }
  0xeb   : > { %v892_v23 = vpop.f32.mrf.mxu1  ;;  %v326_v24 = vpop.f32.mrf.mxu0 }
  0xec   : > { %v413_v26 = vadd.f32 %v892_v23, %v881_v22 }
  0xed   : > { %v407_v25 = vpop.f32.mrf.mxu1 }
  0xee   : > { %v408_v29 = vadd.f32 %v407_v25, %v326_v24 }
  0xf1   : > { %v903_v28 = vpop.f32.mrf.mxu0 }
  0xf2   : > { %v500_v30 = vadd.f32 %v903_v28, %v413_v26 }
  0xf3   : > { %v490_v31 = vpop.f32.mrf.mxu0 }
  0xf4   : > { %v508_v32 = vadd.f32 %v831_v27, %v500_v30  ;;  %v499_v33 = vadd.f32 %v490_v31, %v408_v29 }
  0xf6   : > { %v507_v34 = vadd.f32 %v831_v27, %v499_v33  ;;  %v510_v35 = vmax.f32 %v508_v32, 0.0 }
  0xf8   : > { %v509_v36 = vmax.f32 %v507_v34, 0.0  ;;  %v512_v39 = vadd.f32 %v510_v35, %v246_v8 }
  0xfa   : > { %v511_v37 = vadd.f32 %v509_v36, %v245_v7  ;;  %v516_v40 = vsel %vm247_vm1, %v512_v39, 0.0 }
  0xfc   : > { %v513_v38 = vsel %vm247_vm1, %v511_v37, 0.0 }
  0xfd   : > { %514 = vadd.xlane.f32.xlu0 %v513_v38 }
 0x101   : > { %517 = vadd.xlane.f32.xlu0 %v516_v40 }
 0x186   : > { %v515_v41 = vpop.xlane.xlu0 %514 }
 0x187   : > { %v524_v42 = vmul.f32 0.03125, %v515_v41 }
 0x189   : > { %v526_v43 = vsub.f32 %v511_v37, %v524_v42 }
 0x18a   : > { %v518_v44 = vpop.xlane.xlu0 %517 }
 0x18b   : > { %v525_v45 = vmul.f32 0.03125, %v518_v44  ;;  %v528_v46 = vmul.f32 %v526_v43, %v526_v43 }
 0x18d   : > { %v527_v47 = vsub.f32 %v512_v39, %v525_v45  ;;  %v530_v48 = vsel %vm247_vm1, %v528_v46, 0.0 }
 0x18e   : > { %531 = vadd.xlane.f32.xlu1 %v530_v48 }
 0x18f   : > { %v529_v49 = vmul.f32 %v527_v47, %v527_v47 }
 0x191   : > { %v533_v50 = vsel %vm247_vm1, %v529_v49, 0.0 }
 0x192   : > { %534 = vadd.xlane.f32.xlu1 %v533_v50 }
 0x217   : > { %v532_v51 = vpop.xlane.xlu1 %531 }
 0x218   : > { %v538_v52 = vmul.f32 0.03125, %v532_v51 }
 0x21a   : > { %v540_v53 = vadd.f32 1e-05, %v538_v52 }
 0x21b   : > { %v535_v54 = vpop.xlane.xlu1 %534 }
 0x21c   : > { %1027 = vrsqrt.f32 %v540_v53  ;;  %v539_v55 = vmul.f32 0.03125, %v535_v54 }
 0x21e   : > { %v541_v56 = vadd.f32 1e-05, %v539_v55 }
 0x220   : > { %1029 = vrsqrt.f32 %v541_v56 }
 0x229   : > { %v1028_v57 = vpop.eup %1027 }
 0x22a   : > { %v544_v59 = vmul.f32 %v1028_v57, %v526_v43 }
 0x22c   : > { %v552_v61 = vmul.f32 %v832_v58, %v544_v59 }
 0x22d   : > { %v1030_v62 = vpop.eup %1029 }
 0x22e   : > { %v560_v63 = vadd.f32 %v833_v60, %v552_v61  ;;  %v545_v0 = vmul.f32 %v1030_v62, %v527_v47 }
 0x230   : > { %562 = vst.msk [vmem:[%s1242_s21] sm:$0xff] %vm247_vm1, %v560_v63  ;;  %v553_v1 = vmul.f32 %v832_v58, %v545_v0  ;;  %570 = sbr.rel (!%p1218_p5) target bundleno = 604 (0x25c), region = 40 }
 0x232   : > { %v561_v2 = vadd.f32 %v833_v60, %v553_v1 }
 0x234   : > { %563 = vst.msk [vmem:[%s1242_s21 + $0x8] sm:$0xff] %vm247_vm1, %v561_v2 }
 0x235   : > { %s1377_s10 = smov (!%p573_p12, %s572_s10), 2 }
 0x236   : > { %s836_s11 = sshll.u32 %s1377_s10, 7 }
 0x237   : > { %p839_p13 = scmp.eq.s32.totalorder %s836_s11, 0 }
 0x238   : > { %s1320_s23 = sshrl.u32 (!%p839_p13), %s1377_s10, 1 }
 0x239   : > { %583 = sbr.rel (%p839_p13) target bundleno = 604 (0x25c), region = 44  ;;  %p840_p0 = scmp.le.s32.totalorder (!%p839_p13), %s1320_s23, 0 }
 0x23e   : > { %751 = sbr.rel (%p840_p0) target bundleno = 587 (0x24b), region = 124  ;;  %s1119_s15 = smov (!%p840_p0), %s1317_s28  }
 0x23f   : > { %s1123_s29 = smov (!%p840_p0), %s1242_s21   ;;  %s1127_s14 = smov (!%p840_p0), 0  }
 0x240   : > { %s1131_s30 = smov (!%p840_p0), 0  }
 0x243 LB: >> { %v648_v3 = vld [vmem:[%s1125_s29] sm:$0xff]  ;;  %v650_v4 = vld [vmem:[%s1125_s29 + $0x8] sm:$0xff]  ;;  %s652_s4 = sadd.s32 1, %s1129_s14  ;;  %s642_s30 = sadd.s32 1, %s1133_s30   ;;  %s1133_s30 = sphi %s1131_s30, %s642_s30   ;;  %s1129_s14 = sphi %s1127_s14, %s1128_s14   ;;  %s1125_s29 = sphi %s1123_s29, %s657_s29   ;;  %s1121_s15 = sphi %s1119_s15, %s658_s15  }
 0x244   : >> { %649 = vst [vmem:[%s1121_s15] sm:$0xff] %v648_v3  ;;  %651 = vst [vmem:[%s1121_s15 + $0x8] sm:$0xff] %v650_v4  ;;  %p653_p1 = scmp.ge.s32.totalorder %s652_s4, %s1320_s23  ;;  %p641_p2 = scmp.ge.s32.totalorder %s642_s30, %s1320_s23 }
 0x246   : >> { %s1379_s4 = smov (%p653_p1, %s652_s4), 0  ;;  %644 = sbr.rel (!%p641_p2) target bundleno = 579 (0x243), region = 130 }
 0x247   : >> { %s841_s5 = sshll.u32 %s1379_s4, 4  ;;  %s1128_s14 = smov %s1379_s4  }
 0x248   : >> { %s657_s29 = scalar_lea.vmem %s1242_s21, %s841_s5 [#allocation3]   ;;  %s658_s15 = scalar_lea.vmem %s1317_s28, %s841_s5  }
 0x24b PF: > { %s1330_s6 = sand.u32 1, %s1377_s10   ;;  %s851_s7 = sshll.u32 %s1320_s23, 4 }
 0x24c   : > { %s663_s8 = scalar_lea.vmem %s1242_s21, %s851_s7 [#allocation3]   ;;  %s665_s9 = scalar_lea.vmem %s1317_s28, %s851_s7  }
 0x24d   : > { %p846_p3 = scmp.le.s32.totalorder %s1330_s6, 0 }
 0x24e   : > { %s1135_s12 = smov (!%p846_p3), %s665_s9   ;;  %s1139_s22 = smov (!%p846_p3), %s663_s8  }
 0x24f   : > { %765 = sbr.rel (%p846_p3) target bundleno = 604 (0x25c), region = 135  ;;  %s1143_s24 = smov (!%p846_p3), 0  }
 0x250   : > { %s1147_s11 = smov (!%p846_p3), 0  }
 0x254 LB: >> { %v675_v5 = vld [vmem:[%s1141_s22] sm:$0xff]  ;;  %s677_s10 = sadd.s32 1, %s1145_s24  ;;  %s669_s11 = sadd.s32 1, %s1149_s11   ;;  %s1149_s11 = sphi %s1147_s11, %s669_s11   ;;  %s1145_s24 = sphi %s1143_s24, %s1144_s24   ;;  %s1141_s22 = sphi %s1139_s22, %s682_s22   ;;  %s1137_s12 = sphi %s1135_s12, %s683_s12  }
 0x255   : >> { %676 = vst [vmem:[%s1137_s12] sm:$0xff] %v675_v5  ;;  %p678_p4 = scmp.ge.s32.totalorder %s677_s10, %s1330_s6  ;;  %p668_p5 = scmp.ge.s32.totalorder %s669_s11, %s1330_s6 }
 0x257   : >> { %s1381_s10 = smov (%p678_p4, %s677_s10), 0  ;;  %671 = sbr.rel (!%p668_p5) target bundleno = 596 (0x254), region = 141 }
 0x258   : >> { %s847_s21 = sshll.u32 %s1381_s10, 3  ;;  %s1144_s24 = smov %s1381_s10  }
 0x259   : >> { %s682_s22 = scalar_lea.vmem %s663_s8, %s847_s21 [#allocation3]   ;;  %s683_s12 = scalar_lea.vmem %s665_s9, %s847_s21  }
 0x25c PF: > { %s13_s18 = sadd.s32 1, %s1117_s18   ;;  %s1364_s12 = smov %s1097_s13 }
 0x25d   : > { %p10_p6 = scmp.ge.s32.totalorder %s13_s18, 8   ;;  %s1365_s13 = smov %s1229_s27 }
 0x25e   : > { %s1366_s14 = smov %s1109_s16  ;;  %s1367_s15 = smov %s1113_s17 }
 0x25f   : > { %s1368_s16 = smov %s1371_s19  ;;  %s1369_s17 = smov %s1375_s20 }
 0x260   :  { %12 = sbr.rel (!%p10_p6) target bundleno = 4 (0x4), region = 152 }

// kernel: tpu_custom_call.1
= control target key start
LH: loop header
LB: loop body
LE: loop exit
PB: predicated region body
PF: predicated region fallthrough
CT: control target
= control target key end

     0   :  { %s1172_s12 = smov 0   ;;  %s1174_s13 = smov 0   ;;  %s1359_s0 = inlined_call_operand.vmem [shape: f32[2,1,40,32], index: 0, kind: input, shape index: {}]   ;;  %s1360_s1 = inlined_call_operand.vmem [shape: f32[3,32,32], index: 1, kind: input, shape index: {}]   ;;  %s1361_s2 = inlined_call_operand.vmem [shape: f32[3,1,32], index: 2, kind: input, shape index: {}]   ;;  %s1362_s3 = inlined_call_operand.vmem [shape: f32[2,1,40,32], index: 3, kind: output, shape index: {}]  }
   0x1   :  { %s1176_s14 = smov 0   ;;  %s1178_s15 = smov 0  }
   0x2   :  { %s1180_s16 = smov 0   ;;  %s1182_s17 = smov 0  }
   0x3   :  { %s1184_s18 = smov 0  }
   0x4 LB: > { %s22_s19 = sadd.s32 1, %s1109_s16  ;;  %s25_s20 = sadd.s32 1, %s1113_s17  ;;  %s1117_s18 = sphi %s1184_s18, %s13_s18   ;;  %s1113_s17 = sphi %s1182_s17, %s1369_s17   ;;  %s1109_s16 = sphi %s1180_s16, %s1368_s16   ;;  %s1105_s15 = sphi %s1178_s15, %s1367_s15   ;;  %s1101_s14 = sphi %s1176_s14, %s1366_s14   ;;  %s1097_s13 = sphi %s1174_s13, %s1365_s13   ;;  %s1093_s12 = sphi %s1172_s12, %s1364_s12  }
   0x5   : > { %p23_p0 = scmp.ge.s32.totalorder %s22_s19, 3  ;;  %s806_s21 = sadd.s32 4294967295, %s1117_s18  }
   0x6   : > { %p114_p1 = scmp.ne.s32.totalorder %s1097_s13, %s1093_s12  ;;  %p115_p2 = scmp.eq.s32.totalorder %s806_s21, 5 }
   0x7   : > { %s1371_s19 = smov (%p23_p0, %s22_s19), 0  ;;  %s1373_s20 = smov (!%p23_p0, %s25_s20), %s1113_s17 }
   0x8   : > { %s100_s22 = ssub.s32 %s1109_s16, %s1371_s19  ;;  %p27_p3 = scmp.ge.s32.totalorder %s1373_s20, 2 }
   0x9   : > { %p810_p4 = scmp.ge.s32.totalorder %s1117_s18, 1  ;;  %p1218_p5 = por %p115_p2, %p114_p1 }
   0xa   : > { %p166_p6 = scmp.lt.s32.totalorder %s1117_s18, 7  ;;  %s1375_s20 = smov (%p27_p3, %s1373_s20), 0 }
   0xb   : > { %s99_s24 = ssub.s32 %s1113_s17, %s1375_s20  ;;  %s104_s26 = sadd.s32 1, %s1097_s13 }
   0xc   : > { %p167_p7 = pnand %p810_p4, %p166_p6  ;;  %s101_s25 = sor.u32 %s100_s22, %s99_s24 }
   0xd   : > { %p102_p8 = scmp.eq.s32.totalorder %s101_s25, 0  ;;  %s194_s28 = sand.u32 (!%p167_p7), 1, %s1093_s12  }
   0xe   : > { %170 = sbr.rel (%p167_p7) target bundleno = 604 (0x25c), region = 32  ;;  %s1233_s29 = sshll.u32 (!%p167_p7), %s1101_s14, 1 }
   0xf   : > { %s1229_s27 = scalar_select %p102_p8, %s1097_s13, %s104_s26  }
  0x10   : > { %s811_s30 = sshll.u32 (!%p167_p7), %s194_s28, 4  ;;  %p202_p9 = scmp.lt.s32.totalorder (!%p167_p7), %s1105_s15, 1 }
  0x11   : > { %p204_p10 = scmp.lt.s32.totalorder (!%p167_p7), %s1233_s29, 4  ;;  %s1242_s21 = scalar_lea.vmem (!%p167_p7), [#allocation3], %s811_s30  }
  0x12   : > { %p814_p11 = scmp.ne.s32.totalorder (!%p167_p7), %s1101_s14, 0 }
  0x13   : > { %s203_s4 = scalar_select %p202_p9, %s1105_s15, 1 }
  0x14   : > { %s205_s5 = scalar_select %p204_p10, %s1233_s29, 4 }
  0x15   : > { %s904_s6 = smul.u32 5, %s203_s4 }
  0x16   : > { %223 = sbr.rel (%p814_p11) target bundleno = 29 (0x1d), region = 36 }
  0x17   : > { %s207_s7 = sadd.s32 %s904_s6, %s205_s5 }
  0x18   : > { %s813_s8 = sshll.u32 %s207_s7, 3 }
  0x19   : > { %s209_s11 = scalar_lea.vmem %s1359_s0, %s813_s8 }
  0x1b   : > { %vm224_vm0 = vcmask 261120   ;;  %v1151_v0 = vmov 0.0  }
  0x1c   : > { %225 = vst.msk [vmem:[#allocation2] sm:$0xff] %vm224_vm0, %v1151_v0 }
  0x1d PF: > { %v818_v1 = vld [vmem:[%s1360_s1 + $0x38] sm:$0xff]  ;;  %v817_v3 = vld [vmem:[%s1360_s1 + $0x30] sm:$0xff]  ;;  %vm247_vm1 = vcmask 261120   ;;  %v816_v5 = vld [vmem:[%s1360_s1 + $0x28] sm:$0xff]  ;;  %vm522_vm2 = vcmask 257024   ;;  %s572_s10 = ssub.s32 (%p1218_p5), 5, %s1233_s29 }
  0x1e   : > { %v229_v2 = vld [vmem:[%s1360_s1 + $0x18] sm:$0xff]  ;;  %871 = vmatprep.subr.mxu0 %v818_v1  ;;  %v228_v4 = vld [vmem:[%s1360_s1 + $0x10] sm:$0xff]  ;;  %v227_v6 = vld [vmem:[%s1360_s1 + $0x8] sm:$0xff]  ;;  %s905_s12 = smul.u32 (%p1218_p5), 5, %s1105_s15  ;;  %p573_p12 = scmp.lt.s32.totalorder (%p1218_p5), %s572_s10, 2 }
  0x1f   : > { %882 = vmatprep.subr.mxu1 %v229_v2  ;;  %872 = vmatpush3.msra.mxu0 %v818_v1  ;;  %v245_v7 = vld [vmem:[%s209_s11] sm:$0xff]  ;;  %v246_v8 = vld [vmem:[%s209_s11 + $0x8] sm:$0xff]  ;;  %v822_v11 = vld [vmem:[%s1360_s1 + $0x58] sm:$0xff] }
  0x20   : > { %883 = vmatpush3.msra.mxu1 %v229_v2  ;;  %873 = vmatprep.subr.mxu0 %v817_v3  ;;  %248 = vst.msk [vmem:[#allocation2 + $0x8] sm:$0xff] %vm247_vm1, %v245_v7  ;;  %v815_v9 = vld [vmem:[%s1360_s1 + $0x20] sm:$0xff]  ;;  %249 = vst.msk [vmem:[#allocation2 + $0x10] sm:$0xff] %vm247_vm1, %v246_v8  ;;  %v821_v12 = vld [vmem:[%s1360_s1 + $0x50] sm:$0xff]  ;;  %s578_s22 = sadd.s32 (%p1218_p5), %s905_s12, %s1233_s29 }
  0x21   : > { %884 = vmatprep.subr.mxu1 %v228_v4  ;;  %874 = vmatpush3.msra.mxu0 %v817_v3  ;;  %v226_v10 = vld [vmem:[%s1360_s1] sm:$0xff]  ;;  %v820_v19 = vld [vmem:[%s1360_s1 + $0x48] sm:$0xff]  ;;  %s838_s24 = sshll.u32 (%p1218_p5), %s578_s22, 3 }
  0x22   : > { %885 = vmatpush3.msra.mxu1 %v228_v4  ;;  %875 = vmatprep.subr.mxu0 %v816_v5  ;;  %v819_v20 = vld [vmem:[%s1360_s1 + $0x40] sm:$0xff]  ;;  %s1317_s28 = scalar_lea.vmem (%p1218_p5), %s1362_s3, %s838_s24  }
  0x23   : > { %886 = vmatprep.subr.mxu1 %v227_v6  ;;  %876 = vmatpush3.msra.mxu0 %v816_v5  ;;  %v831_v27 = vld [vmem:[%s1361_s2] ss:$0 sm:$0xff]  ;;  %v832_v58 = vld [vmem:[%s1361_s2 + $0x1] ss:$0 sm:$0xff]  ;;  %v833_v60 = vld [vmem:[%s1361_s2 + $0x2] ss:$0 sm:$0xff] }
  0x24   : > { %887 = vmatpush3.msra.mxu1 %v227_v6  ;;  %877 = vmatprep.subr.mxu0 %v815_v9 }
  0x25   : > { %888 = vmatprep.subr.mxu1 %v226_v10  ;;  %878 = vmatpush3.msra.mxu0 %v815_v9 }
  0x26   : > { %889 = vmatpush3.msra.mxu1 %v226_v10  ;;  %893 = vmatprep.subr.mxu0 %v822_v11 }
  0x27   : > { %v252_v13 = vld [vmem:[#allocation2 + $0x6] sm:$0xff]  ;;  %v521_v16 = vld [vmem:[#allocation2 + $0x14] sm:$0xf] }
  0x28   : > { %v250_v14 = vld [vmem:[#allocation2 + $0x4] sm:$0xff]  ;;  %879 = vmatprep.mubr.msk.f32.mxu0 %vm247_vm1, %v252_v13  ;;  %v253_v17 = vld [vmem:[#allocation2 + $0xe] sm:$0xff] }
  0x29   : > { %v416_v15 = vld [vmem:[#allocation2 + $0x8] sm:$0xff]  ;;  %890 = vmatprep.mubr.msk.f32.mxu1 %vm247_vm1, %v250_v14  ;;  %523 = vst.msk [vmem:[#allocation2 + $0x4] sm:$0xf] %vm522_vm2, %v521_v16  ;;  %880 = vmatmul.mubr.msk.f32.vlgmr.msra.gmra.mxu0 %vm247_vm1, %v253_v17  ;;  %v417_v21 = vld [vmem:[#allocation2 + $0x10] sm:$0xff] }
  0x2a   : > { %v251_v18 = vld [vmem:[#allocation2 + $0xc] sm:$0xff]  ;;  %894 = vmatpush3.msra.mxu0 %v822_v11  ;;  %901 = vmatprep.mubr.msk.f32.mxu0 %vm247_vm1, %v416_v15 }
  0x2b   : > { %891 = vmatmul.mubr.msk.f32.vlgmr.msra.gmra.mxu1 %vm247_vm1, %v251_v18  ;;  %895 = vmatprep.subr.mxu0 %v821_v12 }
  0x2c   : > { %896 = vmatpush3.msra.mxu0 %v821_v12 }
  0x2d   : > { %897 = vmatprep.subr.mxu0 %v820_v19 }
  0x2e   : > { %898 = vmatpush3.msra.mxu0 %v820_v19 }
  0x2f   : > { %899 = vmatprep.subr.mxu0 %v819_v20 }
  0x30   : > { %900 = vmatpush3.msra.mxu0 %v819_v20 }
  0x31   : > { %902 = vmatmul.mubr.msk.f32.vlgmr.msra.gmra.mxu0 %vm247_vm1, %v417_v21 }
  0xe9   : > { %v881_v22 = vpop.f32.mrf.mxu0 }
  0xeb   : > { %v892_v23 = vpop.f32.mrf.mxu1  ;;  %v326_v24 = vpop.f32.mrf.mxu0 }
  0xec   : > { %v413_v26 = vadd.f32 %v892_v23, %v881_v22 }
  0xed   : > { %v407_v25 = vpop.f32.mrf.mxu1 }
  0xee   : > { %v408_v29 = vadd.f32 %v407_v25, %v326_v24 }
  0xf1   : > { %v903_v28 = vpop.f32.mrf.mxu0 }
  0xf2   : > { %v500_v30 = vadd.f32 %v903_v28, %v413_v26 }
  0xf3   : > { %v490_v31 = vpop.f32.mrf.mxu0 }
  0xf4   : > { %v508_v32 = vadd.f32 %v831_v27, %v500_v30  ;;  %v499_v33 = vadd.f32 %v490_v31, %v408_v29 }
  0xf6   : > { %v507_v34 = vadd.f32 %v831_v27, %v499_v33  ;;  %v510_v35 = vmax.f32 %v508_v32, 0.0 }
  0xf8   : > { %v509_v36 = vmax.f32 %v507_v34, 0.0  ;;  %v512_v39 = vadd.f32 %v510_v35, %v246_v8 }
  0xfa   : > { %v511_v37 = vadd.f32 %v509_v36, %v245_v7  ;;  %v516_v40 = vsel %vm247_vm1, %v512_v39, 0.0 }
  0xfc   : > { %v513_v38 = vsel %vm247_vm1, %v511_v37, 0.0 }
  0xfd   : > { %514 = vadd.xlane.f32.xlu0 %v513_v38 }
 0x101   : > { %517 = vadd.xlane.f32.xlu0 %v516_v40 }
 0x186   : > { %v515_v41 = vpop.xlane.xlu0 %514 }
 0x187   : > { %v524_v42 = vmul.f32 0.03125, %v515_v41 }
 0x189   : > { %v526_v43 = vsub.f32 %v511_v37, %v524_v42 }
 0x18a   : > { %v518_v44 = vpop.xlane.xlu0 %517 }
 0x18b   : > { %v525_v45 = vmul.f32 0.03125, %v518_v44  ;;  %v528_v46 = vmul.f32 %v526_v43, %v526_v43 }
 0x18d   : > { %v527_v47 = vsub.f32 %v512_v39, %v525_v45  ;;  %v530_v48 = vsel %vm247_vm1, %v528_v46, 0.0 }
 0x18e   : > { %531 = vadd.xlane.f32.xlu1 %v530_v48 }
 0x18f   : > { %v529_v49 = vmul.f32 %v527_v47, %v527_v47 }
 0x191   : > { %v533_v50 = vsel %vm247_vm1, %v529_v49, 0.0 }
 0x192   : > { %534 = vadd.xlane.f32.xlu1 %v533_v50 }
 0x217   : > { %v532_v51 = vpop.xlane.xlu1 %531 }
 0x218   : > { %v538_v52 = vmul.f32 0.03125, %v532_v51 }
 0x21a   : > { %v540_v53 = vadd.f32 1e-05, %v538_v52 }
 0x21b   : > { %v535_v54 = vpop.xlane.xlu1 %534 }
 0x21c   : > { %1027 = vrsqrt.f32 %v540_v53  ;;  %v539_v55 = vmul.f32 0.03125, %v535_v54 }
 0x21e   : > { %v541_v56 = vadd.f32 1e-05, %v539_v55 }
 0x220   : > { %1029 = vrsqrt.f32 %v541_v56 }
 0x229   : > { %v1028_v57 = vpop.eup %1027 }
 0x22a   : > { %v544_v59 = vmul.f32 %v1028_v57, %v526_v43 }
 0x22c   : > { %v552_v61 = vmul.f32 %v832_v58, %v544_v59 }
 0x22d   : > { %v1030_v62 = vpop.eup %1029 }
 0x22e   : > { %v560_v63 = vadd.f32 %v833_v60, %v552_v61  ;;  %v545_v0 = vmul.f32 %v1030_v62, %v527_v47 }
 0x230   : > { %562 = vst.msk [vmem:[%s1242_s21] sm:$0xff] %vm247_vm1, %v560_v63  ;;  %v553_v1 = vmul.f32 %v832_v58, %v545_v0  ;;  %570 = sbr.rel (!%p1218_p5) target bundleno = 604 (0x25c), region = 40 }
 0x232   : > { %v561_v2 = vadd.f32 %v833_v60, %v553_v1 }
 0x234   : > { %563 = vst.msk [vmem:[%s1242_s21 + $0x8] sm:$0xff] %vm247_vm1, %v561_v2 }
 0x235   : > { %s1377_s10 = smov (!%p573_p12, %s572_s10), 2 }
 0x236   : > { %s836_s11 = sshll.u32 %s1377_s10, 7 }
 0x237   : > { %p839_p13 = scmp.eq.s32.totalorder %s836_s11, 0 }
 0x238   : > { %s1320_s23 = sshrl.u32 (!%p839_p13), %s1377_s10, 1 }
 0x239   : > { %583 = sbr.rel (%p839_p13) target bundleno = 604 (0x25c), region = 44  ;;  %p840_p0 = scmp.le.s32.totalorder (!%p839_p13), %s1320_s23, 0 }
 0x23e   : > { %751 = sbr.rel (%p840_p0) target bundleno = 587 (0x24b), region = 124  ;;  %s1119_s15 = smov (!%p840_p0), %s1317_s28  }
 0x23f   : > { %s1123_s29 = smov (!%p840_p0), %s1242_s21   ;;  %s1127_s14 = smov (!%p840_p0), 0  }
 0x240   : > { %s1131_s30 = smov (!%p840_p0), 0  }
 0x243 LB: >> { %v648_v3 = vld [vmem:[%s1125_s29] sm:$0xff]  ;;  %v650_v4 = vld [vmem:[%s1125_s29 + $0x8] sm:$0xff]  ;;  %s652_s4 = sadd.s32 1, %s1129_s14  ;;  %s642_s30 = sadd.s32 1, %s1133_s30   ;;  %s1133_s30 = sphi %s1131_s30, %s642_s30   ;;  %s1129_s14 = sphi %s1127_s14, %s1128_s14   ;;  %s1125_s29 = sphi %s1123_s29, %s657_s29   ;;  %s1121_s15 = sphi %s1119_s15, %s658_s15  }
 0x244   : >> { %649 = vst [vmem:[%s1121_s15] sm:$0xff] %v648_v3  ;;  %651 = vst [vmem:[%s1121_s15 + $0x8] sm:$0xff] %v650_v4  ;;  %p653_p1 = scmp.ge.s32.totalorder %s652_s4, %s1320_s23  ;;  %p641_p2 = scmp.ge.s32.totalorder %s642_s30, %s1320_s23 }
 0x246   : >> { %s1379_s4 = smov (%p653_p1, %s652_s4), 0  ;;  %644 = sbr.rel (!%p641_p2) target bundleno = 579 (0x243), region = 130 }
 0x247   : >> { %s841_s5 = sshll.u32 %s1379_s4, 4  ;;  %s1128_s14 = smov %s1379_s4  }
 0x248   : >> { %s657_s29 = scalar_lea.vmem %s1242_s21, %s841_s5 [#allocation3]   ;;  %s658_s15 = scalar_lea.vmem %s1317_s28, %s841_s5  }
 0x24b PF: > { %s1330_s6 = sand.u32 1, %s1377_s10   ;;  %s851_s7 = sshll.u32 %s1320_s23, 4 }
 0x24c   : > { %s663_s8 = scalar_lea.vmem %s1242_s21, %s851_s7 [#allocation3]   ;;  %s665_s9 = scalar_lea.vmem %s1317_s28, %s851_s7  }
 0x24d   : > { %p846_p3 = scmp.le.s32.totalorder %s1330_s6, 0 }
 0x24e   : > { %s1135_s12 = smov (!%p846_p3), %s665_s9   ;;  %s1139_s22 = smov (!%p846_p3), %s663_s8  }
 0x24f   : > { %765 = sbr.rel (%p846_p3) target bundleno = 604 (0x25c), region = 135  ;;  %s1143_s24 = smov (!%p846_p3), 0  }
 0x250   : > { %s1147_s11 = smov (!%p846_p3), 0  }
 0x254 LB: >> { %v675_v5 = vld [vmem:[%s1141_s22] sm:$0xff]  ;;  %s677_s10 = sadd.s32 1, %s1145_s24  ;;  %s669_s11 = sadd.s32 1, %s1149_s11   ;;  %s1149_s11 = sphi %s1147_s11, %s669_s11   ;;  %s1145_s24 = sphi %s1143_s24, %s1144_s24   ;;  %s1141_s22 = sphi %s1139_s22, %s682_s22   ;;  %s1137_s12 = sphi %s1135_s12, %s683_s12  }
 0x255   : >> { %676 = vst [vmem:[%s1137_s12] sm:$0xff] %v675_v5  ;;  %p678_p4 = scmp.ge.s32.totalorder %s677_s10, %s1330_s6  ;;  %p668_p5 = scmp.ge.s32.totalorder %s669_s11, %s1330_s6 }
 0x257   : >> { %s1381_s10 = smov (%p678_p4, %s677_s10), 0  ;;  %671 = sbr.rel (!%p668_p5) target bundleno = 596 (0x254), region = 141 }
 0x258   : >> { %s847_s21 = sshll.u32 %s1381_s10, 3  ;;  %s1144_s24 = smov %s1381_s10  }
 0x259   : >> { %s682_s22 = scalar_lea.vmem %s663_s8, %s847_s21 [#allocation3]   ;;  %s683_s12 = scalar_lea.vmem %s665_s9, %s847_s21  }
 0x25c PF: > { %s13_s18 = sadd.s32 1, %s1117_s18   ;;  %s1364_s12 = smov %s1097_s13 }
 0x25d   : > { %p10_p6 = scmp.ge.s32.totalorder %s13_s18, 8   ;;  %s1365_s13 = smov %s1229_s27 }
 0x25e   : > { %s1366_s14 = smov %s1109_s16  ;;  %s1367_s15 = smov %s1113_s17 }
 0x25f   : > { %s1368_s16 = smov %s1371_s19  ;;  %s1369_s17 = smov %s1375_s20 }
 0x260   :  { %12 = sbr.rel (!%p10_p6) target bundleno = 4 (0x4), region = 152 }

</bundles_post_ra>
